<compile_context>
chip_gen: v6e
topology: v6e:2x2x1
jax: 0.10.0
libtpu: 0.0.40
codegen_flags: <defaults>
</compile_context>

<pallas_src>
import functools

import jax
import jax.numpy as jnp
from jax.experimental import pallas as pl
from jax.experimental.pallas import tpu as pltpu


def _ceil_to(a, m):
    return -(-a // m) * m


def _gelu_in_bf16_default():
    """bf16 VPU/EUP exists on v6e/v7x; keep the f32 GELU path on <= v5."""
    try:
        kind = jax.devices()[0].device_kind.lower()
    except Exception:
        return True
    return not any(t in kind for t in ("v2", "v3", "v4", "v5"))


def _mlp_kernel(x_ref, w1_ref, b1_ref, w2_ref, b2_ref, o_ref, *, gelu_in_bf16):
    # x:  [tm, 128] f32   (pack=4 logical 32-wide rows packed per 128-lane row)
    # w1: [128, 256] bf16 block-diagonal      b1: [1, 256] f32
    # w2: [256, 128] bf16 block-diagonal      b2: [1, 128] f32
    x = x_ref[...].astype(jnp.bfloat16)              # cast in-kernel (no wrapper pass)
    h = jnp.dot(x, w1_ref[...], preferred_element_type=jnp.float32)
    h = h + b1_ref[...]                              # bias add in f32 (1 VALU op/elem)
    if gelu_in_bf16:
        # v6e / v7x: bf16 VPU+EUP -> half the vregs through the tanh-GELU chain,
        # and the operand of the second MXU dot is already bf16.
        h = jax.nn.gelu(h.astype(jnp.bfloat16), approximate=True)
    else:
        # v5e: no bf16 VALU/EUP -> GELU in f32, cast just before the MXU.
        h = jax.nn.gelu(h, approximate=True).astype(jnp.bfloat16)
    o = jnp.dot(h, w2_ref[...], preferred_element_type=jnp.float32)
    o = o + b2_ref[...]
    o_ref[...] = o.astype(o_ref.dtype)


def prepare_params(w1, b1, w2, b2, *, pack=4):
    """Build lane-dense block-diagonal slabs ONCE; reuse across forward calls."""
    eye = jnp.eye(pack, dtype=jnp.float32)
    w1_bd = jnp.kron(eye, w1.astype(jnp.float32)).astype(jnp.bfloat16)  # [pack*Hin, pack*Hff]
    w2_bd = jnp.kron(eye, w2.astype(jnp.float32)).astype(jnp.bfloat16)  # [pack*Hff, pack*Hout]
    b1_p = jnp.tile(b1.astype(jnp.float32), pack).reshape(1, -1)
    b2_p = jnp.tile(b2.astype(jnp.float32), pack).reshape(1, -1)
    return w1_bd, b1_p, w2_bd, b2_p


def data_parallel_naive_forward(x, packed_params, *, tm_max=1024,
                                out_dtype=jnp.float32, gelu_in_bf16=None):
    """Forward of DataParallelNaive wrapping Linear(32,64) + GELU(tanh) + Linear(64,32).

    x : [B, S, H_in] float32  ->  [B, S, H_out] (out_dtype, default float32)
    """
    w1_bd, b1_p, w2_bd, b2_p = packed_params
    if gelu_in_bf16 is None:
        gelu_in_bf16 = _gelu_in_bf16_default()

    B, S, H_in = x.shape
    lane_in = w1_bd.shape[0]          # 128
    ff_p = w1_bd.shape[1]             # 256
    lane_out = w2_bd.shape[1]         # 128
    pack = lane_in // H_in            # 4 logical rows per 128-lane row
    H_ff = ff_p // pack
    H_out = lane_out // pack
    assert lane_in == 128 and lane_out == 128 and pack * H_in == lane_in

    # ---- row packing: pad ONLY to a multiple of pack (<= pack-1 rows) ----
    N = B * S
    Np = _ceil_to(N, pack)
    x2d = x.reshape(N, H_in)
    if Np != N:
        x2d = jnp.pad(x2d, ((0, Np - N), (0, 0)))
    M = Np // pack
    xp = x2d.reshape(M, lane_in)      # free row-major reshape; stays f32

    # ---- tile choice: multiple of 8 (or the full dim when M < 8).  Keep the
    # row grid >= 4 steps when there is enough work so both v7x TensorCores
    # get rows; ragged last block is masked by Pallas (no pad-to-tm). ----
    if M <= 8:
        tm = M
    else:
        tm = min(tm_max, (M // 8) * 8)
        if M >= 32:
            tm = min(tm, _ceil_to(pl.cdiv(M, 4), 8))
        tm = max(tm, 8)
    grid = (pl.cdiv(M, tm),)

    out_itemsize = jnp.dtype(out_dtype).itemsize
    cost = pl.CostEstimate(
        flops=2 * N * (H_in * H_ff + H_ff * H_out),          # useful flops only
        transcendentals=N * H_ff,
        bytes_accessed=(N * H_in * 4 + N * H_out * out_itemsize
                        + w1_bd.size * 2 + w2_bd.size * 2
                        + b1_p.size * 4 + b2_p.size * 4),
    )

    out_p = pl.pallas_call(
        functools.partial(_mlp_kernel, gelu_in_bf16=gelu_in_bf16),
        out_shape=jax.ShapeDtypeStruct((M, lane_out), out_dtype),
        grid=grid,
        in_specs=[
            pl.BlockSpec((tm, lane_in), lambda i: (i, 0)),      # x: streamed f32 tiles
            pl.BlockSpec((lane_in, ff_p), lambda i: (0, 0)),    # w1: resident
            pl.BlockSpec((1, ff_p), lambda i: (0, 0)),          # b1: resident
            pl.BlockSpec((ff_p, lane_out), lambda i: (0, 0)),   # w2: resident
            pl.BlockSpec((1, lane_out), lambda i: (0, 0)),      # b2: resident
        ],
        out_specs=pl.BlockSpec((tm, lane_out), lambda i: (i, 0)),
        compiler_params=pltpu.CompilerParams(
            dimension_semantics=("parallel",),          # shard row grid across TCs (v7x)
            vmem_limit_bytes=32 * 1024 * 1024,          # safe on v7x's smaller VMEM
        ),
        cost_estimate=cost,
    )(xp, w1_bd, b1_p, w2_bd, b2_p)

    out2d = out_p.reshape(Np, H_out)      # free reshape (inverse of the packing)
    if Np != N:
        out2d = out2d[:N]                 # only when pack-padding was actually added
    return out2d.reshape(B, S, H_out)


if __name__ == "__main__":
    B, S, H_IN, H_FF, H_OUT = 2, 8, 32, 64, 32

    # Deterministic parameter init (synthetic; no checkpoint load).
    kx, k1, k2, k3, k4 = jax.random.split(jax.random.PRNGKey(0), 5)
    x = jax.random.normal(kx, (B, S, H_IN), dtype=jnp.float32)
    w1 = (jax.random.normal(k1, (H_IN, H_FF), dtype=jnp.float32)
          * (1.0 / jnp.sqrt(H_IN)))
    b1 = jax.random.normal(k2, (H_FF,), dtype=jnp.float32) * 0.01
    w2 = (jax.random.normal(k3, (H_FF, H_OUT), dtype=jnp.float32)
          * (1.0 / jnp.sqrt(H_FF)))
    b2 = jax.random.normal(k4, (H_OUT,), dtype=jnp.float32) * 0.01

    gelu_bf16 = _gelu_in_bf16_default()
    packed = prepare_params(w1, b1, w2, b2)          # hoisted: built once, reused
    fwd = jax.jit(functools.partial(data_parallel_naive_forward,
                                    gelu_in_bf16=gelu_bf16))
    out = jax.block_until_ready(fwd(x, packed))

    # Reference in plain JAX with matched precision (bf16-rounded inputs and
    # weights, f32 accumulation, tanh GELU in the same dtype the kernel uses;
    # matches PyTorch nn.GELU(approximate='tanh') semantics).
    def ref(x):
        x2 = x.reshape(B * S, H_IN).astype(jnp.bfloat16).astype(jnp.float32)
        w1b = w1.astype(jnp.bfloat16).astype(jnp.float32)
        w2b = w2.astype(jnp.bfloat16).astype(jnp.float32)
        h = x2 @ w1b + b1
        if gelu_bf16:
            h = jax.nn.gelu(h.astype(jnp.bfloat16), approximate=True)
        else:
            h = jax.nn.gelu(h, approximate=True).astype(jnp.bfloat16)
        h = h.astype(jnp.float32)
        return (h @ w2b + b2).reshape(B, S, H_OUT)

    ref_out = jax.block_until_ready(ref(x))
    assert out.shape == (B, S, H_OUT)
    assert jnp.allclose(out, ref_out, atol=1e-2, rtol=1e-2), float(
        jnp.max(jnp.abs(out - ref_out)))

    print("KERNEL_OK")
</pallas_src>

<mosaic_0001>
module attributes {stable_mosaic.version = 11 : i64} {
  func.func @_mlp_kernel(%arg0: i32, %arg1: memref<4x128xf32, #tpu.memory_space<vmem>>, %arg2: memref<128x256xbf16, #tpu.memory_space<vmem>>, %arg3: memref<1x256xf32, #tpu.memory_space<vmem>>, %arg4: memref<256x128xbf16, #tpu.memory_space<vmem>>, %arg5: memref<1x128xf32, #tpu.memory_space<vmem>>, %arg6: memref<4x128xf32, #tpu.memory_space<vmem>>) attributes {dimension_semantics = [#tpu.dimension_semantics<parallel>], iteration_bounds = array<i64: 1>, scalar_prefetch = 0 : i64, scratch_operands = 0 : i64, tpu.core_type = #tpu.core_type<tc>, window_params = [{transform_indices = @transform_0, window_bounds = array<i64: 4, 128>}, {pipeline_mode = #tpu.pipeline_mode<synchronous>, transform_indices = @transform_1, window_bounds = array<i64: 128, 256>}, {pipeline_mode = #tpu.pipeline_mode<synchronous>, transform_indices = @transform_2, window_bounds = array<i64: 1, 256>}, {pipeline_mode = #tpu.pipeline_mode<synchronous>, transform_indices = @transform_3, window_bounds = array<i64: 256, 128>}, {pipeline_mode = #tpu.pipeline_mode<synchronous>, transform_indices = @transform_4, window_bounds = array<i64: 1, 128>}, {transform_indices = @transform_5, window_bounds = array<i64: 4, 128>}]} {
    %c0 = arith.constant 0 : index
    %c0_0 = arith.constant 0 : index
    %0 = vector.load %arg1[%c0, %c0_0] : memref<4x128xf32, #tpu.memory_space<vmem>>, vector<4x128xf32>
    %1 = arith.truncf %0 : vector<4x128xf32> to vector<4x128xbf16>
    %c0_1 = arith.constant 0 : index
    %c0_2 = arith.constant 0 : index
    %2 = vector.load %arg2[%c0_1, %c0_2] : memref<128x256xbf16, #tpu.memory_space<vmem>>, vector<128x256xbf16>
    %cst = arith.constant dense<0.000000e+00> : vector<4x256xf32>
    %3 = tpu.matmul %1, %2, %cst {dimension_numbers = #tpu.dot_dimension_numbers<[1], [0], [0], [1], [0, 0, 1, 1], [], []>} : vector<4x128xbf16>, vector<128x256xbf16>, vector<4x256xf32> -> vector<4x256xf32>
    %c0_3 = arith.constant 0 : index
    %c0_4 = arith.constant 0 : index
    %4 = vector.load %arg3[%c0_3, %c0_4] : memref<1x256xf32, #tpu.memory_space<vmem>>, vector<1x256xf32>
    %5 = vector.broadcast %4 : vector<1x256xf32> to vector<4x256xf32>
    %6 = arith.addf %3, %5 : vector<4x256xf32>
    %7 = arith.truncf %6 : vector<4x256xf32> to vector<4x256xbf16>
    %8 = arith.mulf %7, %7 : vector<4x256xbf16>
    %9 = arith.mulf %7, %8 : vector<4x256xbf16>
    %cst_5 = arith.constant 4.467770e-02 : bf16
    %10 = vector.broadcast %cst_5 : bf16 to vector<4x256xbf16>
    %11 = arith.mulf %10, %9 : vector<4x256xbf16>
    %12 = arith.addf %7, %11 : vector<4x256xbf16>
    %cst_6 = arith.constant 7.968750e-01 : bf16
    %13 = vector.broadcast %cst_6 : bf16 to vector<4x256xbf16>
    %14 = arith.mulf %13, %12 : vector<4x256xbf16>
    %15 = math.tanh %14 : vector<4x256xbf16>
    %cst_7 = arith.constant 1.000000e+00 : bf16
    %16 = vector.broadcast %cst_7 : bf16 to vector<4x256xbf16>
    %17 = arith.addf %16, %15 : vector<4x256xbf16>
    %cst_8 = arith.constant 5.000000e-01 : bf16
    %18 = vector.broadcast %cst_8 : bf16 to vector<4x256xbf16>
    %19 = arith.mulf %18, %17 : vector<4x256xbf16>
    %20 = arith.mulf %7, %19 : vector<4x256xbf16>
    %c0_9 = arith.constant 0 : index
    %c0_10 = arith.constant 0 : index
    %21 = vector.load %arg4[%c0_9, %c0_10] : memref<256x128xbf16, #tpu.memory_space<vmem>>, vector<256x128xbf16>
    %cst_11 = arith.constant dense<0.000000e+00> : vector<4x128xf32>
    %22 = tpu.matmul %20, %21, %cst_11 {dimension_numbers = #tpu.dot_dimension_numbers<[1], [0], [0], [1], [0, 0, 1, 1], [], []>} : vector<4x256xbf16>, vector<256x128xbf16>, vector<4x128xf32> -> vector<4x128xf32>
    %c0_12 = arith.constant 0 : index
    %c0_13 = arith.constant 0 : index
    %23 = vector.load %arg5[%c0_12, %c0_13] : memref<1x128xf32, #tpu.memory_space<vmem>>, vector<1x128xf32>
    %24 = vector.broadcast %23 : vector<1x128xf32> to vector<4x128xf32>
    %25 = arith.addf %22, %24 : vector<4x128xf32>
    %c0_14 = arith.constant 0 : index
    %c0_15 = arith.constant 0 : index
    %26 = vector.load %arg6[%c0_14, %c0_15] : memref<4x128xf32, #tpu.memory_space<vmem>>, vector<4x128xf32>
    tpu.vector_store %arg6[%c0_14, %c0_15], %25 {strides = array<i32>} : memref<4x128xf32, #tpu.memory_space<vmem>>, vector<4x128xf32>,
    return
  }
  func.func @transform_0(%arg0: i32) -> (i32, i32) {
    %c0_i32 = arith.constant 0 : i32
    %c0_i32_0 = arith.constant 0 : i32
    return %arg0, %c0_i32 : i32, i32
  }
  func.func @transform_1(%arg0: i32) -> (i32, i32) {
    %c0_i32 = arith.constant 0 : i32
    %c0_i32_0 = arith.constant 0 : i32
    %c0_i32_1 = arith.constant 0 : i32
    return %c0_i32, %c0_i32_0 : i32, i32
  }
  func.func @transform_2(%arg0: i32) -> (i32, i32) {
    %c0_i32 = arith.constant 0 : i32
    %c0_i32_0 = arith.constant 0 : i32
    %c0_i32_1 = arith.constant 0 : i32
    return %c0_i32, %c0_i32_0 : i32, i32
  }
  func.func @transform_3(%arg0: i32) -> (i32, i32) {
    %c0_i32 = arith.constant 0 : i32
    %c0_i32_0 = arith.constant 0 : i32
    %c0_i32_1 = arith.constant 0 : i32
    return %c0_i32, %c0_i32_0 : i32, i32
  }
  func.func @transform_4(%arg0: i32) -> (i32, i32) {
    %c0_i32 = arith.constant 0 : i32
    %c0_i32_0 = arith.constant 0 : i32
    %c0_i32_1 = arith.constant 0 : i32
    return %c0_i32, %c0_i32_0 : i32, i32
  }
  func.func @transform_5(%arg0: i32) -> (i32, i32) {
    %c0_i32 = arith.constant 0 : i32
    %c0_i32_0 = arith.constant 0 : i32
    return %arg0, %c0_i32 : i32, i32
  }
}

</mosaic_0001>

<bundles_post_ra>
// kernel: data_parallel_naive_forward.1
= control target key start
LH: loop header
LB: loop body
LE: loop exit
PB: predicated region body
PF: predicated region fallthrough
CT: control target
= control target key end

     0   :  { %10 = vsyncpa [#allocation3], 0  ;;  %s611_s0 = inlined_call_operand.vmem [shape: f32[4,128], index: 0, kind: input, shape index: {}]   ;;  %s612_s1 = inlined_call_operand.hbm [shape: bf16[128,256], index: 1, kind: input, shape index: {}]   ;;  %s613_s2 = inlined_call_operand.vmem [shape: f32[1,256], index: 2, kind: input, shape index: {}]   ;;  %s614_s3 = inlined_call_operand.hbm [shape: bf16[256,128], index: 3, kind: input, shape index: {}]   ;;  %s615_s4 = inlined_call_operand.vmem [shape: f32[1,128], index: 4, kind: input, shape index: {}]   ;;  %s616_s5 = inlined_call_operand.vmem [shape: f32[4,128], index: 5, kind: output, shape index: {}]  }
   0x1   :  { %11 = vsyncpa [#allocation5], 0  ;;  %s556_s18 = smov [#allocation2]  }
   0x2   :  { %s19_s19 = sshll.u32 %s556_s18, 4  ;;  %s20_s19 = int_to_ptr.vmem [resolvable:$true] %s19_s19 }
   0x3   :  { %s520_s20 = scalar_lea.vmem %s20_s19, 2048  ;;  %p525_p1 = scmp.lt.s32.totalorder %s20_s19, %s20_s19 }
   0x4   :  { %p521_p0 = scmp.ne.s32.totalorder %s20_s19, %s520_s20  ;;  %p526_p2 = scmp.lt.s32.totalorder %s520_s20, %s520_s20 }
   0x6   :  { %p527_p3 = por %p526_p2, %p525_p1 }
   0x8   :  { %p528_p4 = pnand %p527_p3, %p521_p0 }
   0xa   :  { %531 = shalt.err (!%p528_p4)
}
   0xb   :  { %s557_s21 = smov 128   ;;  %s558_s22 = smov 8  }
   0xc   :  { %25 = dma.hbm_to_vmem [thread:$0]  %s612_s1, 2048, %s20_s19, [#allocation3], %s557_s21, %s557_s21, %s558_s22  }
   0xd   :  { %s559_s25 = smov [#allocation4]  }
   0xe   :  { %s33_s26 = sshll.u32 %s559_s25, 4  ;;  %s34_s26 = int_to_ptr.vmem [resolvable:$true] %s33_s26 }
   0xf   :  { %s540_s27 = scalar_lea.vmem %s34_s26, 2048  ;;  %p545_p6 = scmp.lt.s32.totalorder %s34_s26, %s34_s26 }
  0x10   :  { %p541_p5 = scmp.ne.s32.totalorder %s34_s26, %s540_s27  ;;  %p546_p7 = scmp.lt.s32.totalorder %s540_s27, %s540_s27 }
  0x12   :  { %p547_p8 = por %p546_p7, %p545_p6 }
  0x14   :  { %p548_p9 = pnand %p547_p8, %p541_p5 }
  0x16   :  { %551 = shalt.err (!%p548_p9)
}
  0x17   :  { %s560_s28 = smov 64   ;;  %s561_s29 = smov 4  }
  0x18   :  { %39 = dma.hbm_to_vmem [thread:$0]  %s614_s3, 2048, %s34_s26, [#allocation5], %s560_s28, %s560_s28, %s561_s29  }
  0x19   :  { %552 = dma.done.wait [#allocation3], 2048  }
  0x1a   :  { %553 = vsyncadd [#allocation3], 4294965248 }
  0x1b   :  { %554 = dma.done.wait [#allocation5], 2048  }
  0x1c   :  { %555 = vsyncadd [#allocation5], 4294965248  ;;  %v562_v0 = vmov 0   ;;  %v468_v1 = vld [vmem:[#allocation2 + $0x74] ss:$8 sps:$4 sm:$0xff]   ;;  %v496_v23 = vld [vmem:[#allocation4 + $0x68] sm:$0xff]   ;;  %v73_v35 = vlaneseq }
  0x1d   :  { %195 = vmatprep.mubr.bf16.mxu0 %v562_v0  ;;  %v470_v2 = vld [vmem:[#allocation2 + $0x70] ss:$8 sps:$4 sm:$0xff]   ;;  %163 = vmatprep.subr.bf16.mxu0 %v468_v1  ;;  %v471_v3 = vld [vmem:[#allocation2 + $0x64] ss:$8 sps:$4 sm:$0xff]   ;;  %v473_v4 = vld [vmem:[#allocation2 + $0x60] ss:$8 sps:$4 sm:$0xff]  }
  0x1e   :  { %164 = vmatpush1.bf16.msra.mxu0 %v470_v2  ;;  %v474_v5 = vld [vmem:[#allocation2 + $0x54] ss:$8 sps:$4 sm:$0xff]   ;;  %v476_v6 = vld [vmem:[#allocation2 + $0x50] ss:$8 sps:$4 sm:$0xff]   ;;  %v477_v7 = vld [vmem:[#allocation2 + $0x44] ss:$8 sps:$4 sm:$0xff]  }
  0x1f   :  { %165 = vmatprep.subr.bf16.mxu0 %v471_v3  ;;  %v479_v8 = vld [vmem:[#allocation2 + $0x40] ss:$8 sps:$4 sm:$0xff]   ;;  %v480_v9 = vld [vmem:[#allocation2 + $0x34] ss:$8 sps:$4 sm:$0xff]   ;;  %v482_v10 = vld [vmem:[#allocation2 + $0x30] ss:$8 sps:$4 sm:$0xff]  }
  0x20   :  { %v483_v11 = vld [vmem:[#allocation2 + $0x24] ss:$8 sps:$4 sm:$0xff]   ;;  %v485_v12 = vld [vmem:[#allocation2 + $0x20] ss:$8 sps:$4 sm:$0xff]   ;;  %v486_v13 = vld [vmem:[#allocation2 + $0x14] ss:$8 sps:$4 sm:$0xff]  }
  0x21   :  { %v488_v14 = vld [vmem:[#allocation2 + $0x10] ss:$8 sps:$4 sm:$0xff]   ;;  %v489_v15 = vld [vmem:[#allocation2 + $0x4] ss:$8 sps:$4 sm:$0xff]   ;;  %v491_v16 = vld [vmem:[#allocation2] ss:$8 sps:$4 sm:$0xff]  }
  0x22   :  { %166 = vmatpush1.bf16.msra.mxu0 %v473_v4  ;;  %v53_v17 = vld [vmem:[%s611_s0] sm:$0xf]  ;;  %v492_v19 = vld [vmem:[#allocation4 + $0x78] sm:$0xff]   ;;  %v494_v21 = vld [vmem:[#allocation4 + $0x70] sm:$0xff]   ;;  %v74_v36 = vshrl.u32 %v73_v35, 7 }
  0x23   :  { %167 = vmatprep.subr.bf16.mxu0 %v474_v5  ;;  %v54_v18 = vpack.c.bf16 %v53_v17, %v53_v17  ;;  %v493_v20 = vld [vmem:[#allocation4 + $0x38] sm:$0xff]   ;;  %439 = vmatprep.subr.bf16.mxu1 %v492_v19  ;;  %v495_v22 = vld [vmem:[#allocation4 + $0x30] sm:$0xff]   ;;  %v497_v24 = vld [vmem:[#allocation4 + $0x28] sm:$0xff]  }
  0x24   :  { %440 = vmatpush3.bf16.msra.mxu1 %v493_v20  ;;  %v498_v25 = vld [vmem:[#allocation4 + $0x60] sm:$0xff]   ;;  %v500_v27 = vld [vmem:[#allocation4 + $0x58] sm:$0xff]   ;;  %v502_v29 = vld [vmem:[#allocation4 + $0x50] sm:$0xff]   ;;  %v75_v37 = vsub.s32 0, %v74_v36  ;;  %v79_v39 = vsub.s32 1, %v74_v36 }
  0x25   :  { %441 = vmatprep.subr.bf16.mxu1 %v494_v21  ;;  %v499_v26 = vld [vmem:[#allocation4 + $0x20] sm:$0xff]   ;;  %v501_v28 = vld [vmem:[#allocation4 + $0x18] sm:$0xff]   ;;  %v503_v30 = vld [vmem:[#allocation4 + $0x10] sm:$0xff]  }
  0x26   :  { %168 = vmatpush1.bf16.msra.mxu0 %v476_v6  ;;  %v504_v31 = vld [vmem:[#allocation4 + $0x48] sm:$0xff]   ;;  %v506_v33 = vld [vmem:[#allocation4 + $0x40] sm:$0xff]  }
  0x27   :  { %169 = vmatprep.subr.bf16.mxu0 %v477_v7  ;;  %v505_v32 = vld [vmem:[#allocation4 + $0x8] sm:$0xff]   ;;  %v507_v34 = vld [vmem:[#allocation4] sm:$0xff]  }
  0x28   :  { %442 = vmatpush3.bf16.msra.mxu1 %v495_v22  ;;  %v71_v38 = vld [vmem:[%s613_s2] sm:$0x3] }
  0x29   :  { %443 = vmatprep.subr.bf16.mxu1 %v496_v23  ;;  %v76_v40 = vrot.slane %v71_v38, %v75_v37  ;;  %v80_v41 = vrot.slane %v71_v38, %v79_v39  ;;  %v422_v5 = vld [vmem:[%s615_s4] ss:$0 sm:$0xff] }
  0x2a   :  { %170 = vmatpush1.bf16.msra.mxu0 %v479_v8 }
  0x2b   :  { %171 = vmatprep.subr.bf16.mxu0 %v480_v9 }
  0x2c   :  { %444 = vmatpush3.bf16.msra.mxu1 %v497_v24 }
  0x2d   :  { %445 = vmatprep.subr.bf16.mxu1 %v498_v25 }
  0x2e   :  { %172 = vmatpush1.bf16.msra.mxu0 %v482_v10 }
  0x2f   :  { %173 = vmatprep.subr.bf16.mxu0 %v483_v11 }
  0x30   :  { %446 = vmatpush3.bf16.msra.mxu1 %v499_v26 }
  0x31   :  { %447 = vmatprep.subr.bf16.mxu1 %v500_v27 }
  0x32   :  { %174 = vmatpush1.bf16.msra.mxu0 %v485_v12 }
  0x33   :  { %175 = vmatprep.subr.bf16.mxu0 %v486_v13 }
  0x34   :  { %448 = vmatpush3.bf16.msra.mxu1 %v501_v28 }
  0x35   :  { %449 = vmatprep.subr.bf16.mxu1 %v502_v29 }
  0x36   :  { %176 = vmatpush1.bf16.msra.mxu0 %v488_v14 }
  0x37   :  { %177 = vmatprep.subr.bf16.mxu0 %v489_v15 }
  0x38   :  { %450 = vmatpush3.bf16.msra.mxu1 %v503_v30 }
  0x39   :  { %451 = vmatprep.subr.bf16.mxu1 %v504_v31 }
  0x3a   :  { %178 = vmatpush1.bf16.msra.mxu0 %v491_v16 }
  0x3c   :  { %452 = vmatpush3.bf16.msra.mxu1 %v505_v32 }
  0x3d   :  { %196 = vmatmul.mubr.bf16.vlgmr.msra.gmra.mxu0 %v54_v18  ;;  %453 = vmatprep.subr.bf16.mxu1 %v506_v33 }
  0x40   :  { %454 = vmatpush3.bf16.msra.mxu1 %v507_v34 }
  0xfd   :  { %v197_v42 = vpop.f32.mrf.mxu0 }
  0xfe   :  { %v198_v43 = vadd.f32 %v197_v42, %v76_v40 }
  0xff   :  { %v199_v44 = vpop.f32.mrf.mxu0 }
 0x100   :  { %v204_v45 = vpack.c.bf16 %v198_v43, %v198_v43  ;;  %v200_v46 = vadd.f32 %v199_v44, %v80_v41 }
 0x101   :  { %v201_v47 = vpop.f32.mrf.mxu0 }
 0x102   :  { %v206_v48 = vmul.bf16 %v204_v45, %v204_v45  ;;  %v205_v49 = vpack.c.bf16 %v200_v46, %v200_v46 }
 0x103   :  { %v202_v50 = vpop.f32.mrf.mxu0 }
 0x104   :  { %v208_v51 = vmul.bf16 %v206_v48, %v204_v45  ;;  %v207_v52 = vmul.bf16 %v205_v49, %v205_v49 }
 0x106   :  { %v210_v53 = vmul.bf16 1027030327, %v208_v51  ;;  %v209_v54 = vmul.bf16 %v207_v52, %v205_v49 }
 0x108   :  { %v212_v55 = vadd.bf16 %v210_v53, %v204_v45  ;;  %v211_v56 = vmul.bf16 1027030327, %v209_v54 }
 0x10a   :  { %v214_v57 = vmul.bf16 1061961548, %v212_v55  ;;  %v213_v58 = vadd.bf16 %v211_v56, %v205_v49 }
 0x10c   :  { %508 = vtanh.bf16 %v214_v57  ;;  %v215_v59 = vmul.bf16 1061961548, %v213_v58 }
 0x10e   :  { %510 = vtanh.bf16 %v215_v59 }
 0x11a   :  { %v509_v60 = vpop.eup %508 }
 0x11b   :  { %v218_v61 = vadd.bf16 1065369472, %v509_v60 }
 0x11c   :  { %v511_v62 = vpop.eup %510 }
 0x11d   :  { %v219_v63 = vadd.bf16 1065369472, %v511_v62  ;;  %v220_v0 = vmul.bf16 1056980736, %v218_v61 }
 0x11f   :  { %v221_v1 = vmul.bf16 1056980736, %v219_v63  ;;  %v222_v3 = vmul.bf16 %v220_v0, %v204_v45 }
 0x121   :  { %v223_v2 = vmul.bf16 %v221_v1, %v205_v49 }
 0x123   :  { %391 = vmatprep.mubr.bf16.mxu1 %v223_v2 }
 0x124   :  { %392 = vmatmul.mubr.bf16.vlgmr.msra.gmra.mxu1 %v222_v3 }
 0x1e4   :  { %v455_v4 = vpop.f32.mrf.mxu1 }
 0x1e6   :  { %v456_v6 = vpop.f32.mrf.mxu1 }
 0x1e7   :  { %v457_v7 = vadd.f32 %v456_v6, %v455_v4 }
 0x1e8   :  { %v458_v8 = vpop.f32.mrf.mxu1 }
 0x1e9   :  { %v394_v9 = vadd.f32 %v457_v7, %v422_v5 }
 0x1ea   :  { %v459_v10 = vpop.f32.mrf.mxu1 }
 0x1eb   :  { %399 = vst [vmem:[%s616_s5] sm:$0xf] %v394_v9 }
 0x1ec   :  { %404 = vsyncpa [#allocation3], 1 }
 0x1ed   :  { %405 = vsyncpa [#allocation5], 1 }

</bundles_post_ra>
